<compile_context>
chip_gen: v5e
topology: v5e:2x2
jax: 0.10.0
libtpu: 0.0.40
codegen_flags: <defaults>
</compile_context>

<pallas_src>
import numpy as np
import jax
import jax.numpy as jnp
from jax.experimental import pallas as pl
from jax.experimental.pallas import tpu as pltpu

DROPOUT_P = 0.1


# ------------------------------- kernel ---------------------------------

def _make_kernel(keep_threshold, keep_scale):
    """keep_threshold: int32 constant, keep_scale: f32 constant (baked at trace)."""
    keep_threshold = np.int32(keep_threshold)
    keep_scale = np.float32(keep_scale)
    zero = np.float32(0.0)

    def kernel(tok_ref, emb_ref, pe_ref, bits_ref, out_ref):
        # tok_ref (SMEM scalar-prefetch) is consumed by the index_maps only.
        del tok_ref
        x = emb_ref[...] + pe_ref[...]                      # (1, 1, D) f32
        keep = bits_ref[...] >= keep_threshold              # int32 compare
        out_ref[...] = x * jnp.where(keep, keep_scale, zero)

    return kernel


def positional_encoding(max_sequence_length, d_model):
    """Same math as the torch PositionalEncoding module, precomputed once."""
    position = np.arange(max_sequence_length, dtype=np.float32)[:, None]
    div_term = np.exp(np.arange(0, d_model, 2, dtype=np.float32)
                      * -(np.log(10000.0) / d_model))
    pe = np.zeros((max_sequence_length, d_model), dtype=np.float32)
    pe[:, 0::2] = np.sin(position * div_term)
    pe[:, 1::2] = np.cos(position * div_term)
    return jnp.asarray(pe)


def sentence_embedding(token_ids, emb_table, pe, dropout_key, *,
                       dropout_p=DROPOUT_P, training=True):
    """token_ids: (B,S) int32, emb_table: (V,D) f32, pe: (S,D) f32 -> (B,S,D) f32."""
    B, S = token_ids.shape
    V, D = emb_table.shape
    n_rows = B * S

    # nn.Embedding would raise on out-of-range ids; clamp so the gather DMA
    # can never go out of bounds.
    tok_flat = jnp.clip(token_ids.reshape(n_rows).astype(jnp.int32), 0, V - 1)

    if training and dropout_p > 0.0:
        keep_threshold = int(round(dropout_p * (1 << 31)))   # bits uniform in [0, 2^31)
        keep_scale = 1.0 / (1.0 - dropout_p)
        bits = (jax.random.bits(dropout_key, (n_rows, 1, D), dtype=jnp.uint32)
                >> 1).astype(jnp.int32)
    else:
        keep_threshold = np.iinfo(np.int32).min              # keep everything
        keep_scale = 1.0
        bits = jnp.zeros((n_rows, 1, D), dtype=jnp.int32)

    kernel = _make_kernel(keep_threshold, keep_scale)

    # Reshape so the last two block dims equal the full array dims (clean
    # (8,128) tiling story); the row axis is handled by the grid.
    emb3 = emb_table.reshape(V, 1, D)
    pe3 = pe.reshape(S, 1, D)

    grid_spec = pltpu.PrefetchScalarGridSpec(
        num_scalar_prefetch=1,
        grid=(n_rows,),
        in_specs=[
            # embedding row gather: block index comes from the prefetched ids
            pl.BlockSpec((1, 1, D), lambda i, tok: (tok[i], 0, 0)),
            # positional-encoding row for sequence position i % S
            pl.BlockSpec((1, 1, D), lambda i, tok: (i % S, 0, 0)),
            # per-row dropout bits
            pl.BlockSpec((1, 1, D), lambda i, tok: (i, 0, 0)),
        ],
        out_specs=pl.BlockSpec((1, 1, D), lambda i, tok: (i, 0, 0)),
    )

    out = pl.pallas_call(
        kernel,
        out_shape=jax.ShapeDtypeStruct((n_rows, 1, D), jnp.float32),
        grid_spec=grid_spec,
        compiler_params=pltpu.CompilerParams(
            dimension_semantics=("parallel",)),
    )(tok_flat, emb3, pe3, bits)

    return out.reshape(B, S, D)


# ------------------------- host-side glue (tokenization) -------------------------

START_TOKEN = "<START>"
END_TOKEN = "<END>"
PADDING_TOKEN = "<PAD>"


def build_vocab():
    chars = list("abcdefghijklmnopqrstuvwxyz ") + [START_TOKEN, END_TOKEN, PADDING_TOKEN]
    return {tok: i for i, tok in enumerate(chars)}


def tokenize(sentence, language_to_index, max_sequence_length,
             start_token=True, end_token=True):
    pad_idx = language_to_index[PADDING_TOKEN]
    tokens = [language_to_index.get(t, pad_idx) for t in list(sentence)]
    if start_token:
        tokens.insert(0, language_to_index[START_TOKEN])
    if end_token:
        tokens.append(language_to_index[END_TOKEN])
    tokens += [pad_idx] * (max_sequence_length - len(tokens))
    return np.asarray(tokens, dtype=np.int32)


def batch_tokenize(batch, language_to_index, max_sequence_length,
                   start_token=True, end_token=True):
    return jnp.asarray(
        np.stack([tokenize(s, language_to_index, max_sequence_length,
                           start_token, end_token) for s in batch]))


# ----------------------------------- demo -----------------------------------

if __name__ == "__main__":
    max_sequence_length = 8   # S
    d_model = 32              # D
    language_to_index = build_vocab()
    vocab_size = len(language_to_index)

    key = jax.random.PRNGKey(0)
    emb_key, drop_key = jax.random.split(key)

    # deterministic "nn.Embedding" weights ~ N(0, 1)
    emb_table = jax.random.normal(emb_key, (vocab_size, d_model), dtype=jnp.float32)
    pe = positional_encoding(max_sequence_length, d_model)

    # batch of 2 raw sentences (character-level tokenization as in the module)
    batch = ["hello", "tpu ok"]
    token_ids = batch_tokenize(batch, language_to_index, max_sequence_length,
                               start_token=True, end_token=True)   # (2, 8) int32

    out = sentence_embedding(token_ids, emb_table, pe, drop_key,
                             dropout_p=DROPOUT_P, training=True)
    out = jax.block_until_ready(out)

    # --- pure-JAX reference with the same dropout bits (exact, no matmul) ---
    B, S = token_ids.shape
    V, D = emb_table.shape
    tok = jnp.clip(token_ids.reshape(-1).astype(jnp.int32), 0, V - 1)
    gathered = emb_table[tok].reshape(B, S, D)
    bits_ref = (jax.random.bits(drop_key, (B * S, 1, D), dtype=jnp.uint32)
                >> 1).astype(jnp.int32).reshape(B, S, D)
    thr = np.int32(int(round(DROPOUT_P * (1 << 31))))
    scale = np.float32(1.0 / (1.0 - DROPOUT_P))
    ref = (gathered + pe[None, :, :]) * jnp.where(bits_ref >= thr, scale,
                                                  np.float32(0.0))

    assert out.shape == (B, max_sequence_length, d_model)
    assert out.dtype == jnp.float32
    assert bool(jnp.all(jnp.isfinite(out)))
    assert bool(jnp.allclose(out, ref, atol=1e-6, rtol=1e-6))
    print("KERNEL_OK")
</pallas_src>

<mosaic_0001>
module attributes {stable_mosaic.version = 11 : i64} {
  func.func @kernel(%arg0: i32, %arg1: memref<16xi32, #tpu.memory_space<smem>>, %arg2: memref<1x1x32xf32, #tpu.memory_space<vmem>>, %arg3: memref<1x1x32xf32, #tpu.memory_space<vmem>>, %arg4: memref<1x1x32xi32, #tpu.memory_space<vmem>>, %arg5: memref<1x1x32xf32, #tpu.memory_space<vmem>>) attributes {dimension_semantics = [#tpu.dimension_semantics<parallel>], iteration_bounds = array<i64: 16>, scalar_prefetch = 1 : i64, scratch_operands = 0 : i64, tpu.core_type = #tpu.core_type<tc>, window_params = [{transform_indices = @transform_0, window_bounds = array<i64: 1, 1, 32>}, {transform_indices = @transform_1, window_bounds = array<i64: 1, 1, 32>}, {transform_indices = @transform_2, window_bounds = array<i64: 1, 1, 32>}, {transform_indices = @transform_3, window_bounds = array<i64: 1, 1, 32>}]} {
    %c0 = arith.constant 0 : index
    %c0_0 = arith.constant 0 : index
    %c0_1 = arith.constant 0 : index
    %0 = vector.load %arg2[%c0, %c0_0, %c0_1] : memref<1x1x32xf32, #tpu.memory_space<vmem>>, vector<1x1x32xf32>
    %c0_2 = arith.constant 0 : index
    %c0_3 = arith.constant 0 : index
    %c0_4 = arith.constant 0 : index
    %1 = vector.load %arg3[%c0_2, %c0_3, %c0_4] : memref<1x1x32xf32, #tpu.memory_space<vmem>>, vector<1x1x32xf32>
    %2 = arith.addf %0, %1 : vector<1x1x32xf32>
    %c0_5 = arith.constant 0 : index
    %c0_6 = arith.constant 0 : index
    %c0_7 = arith.constant 0 : index
    %3 = vector.load %arg4[%c0_5, %c0_6, %c0_7] : memref<1x1x32xi32, #tpu.memory_space<vmem>>, vector<1x1x32xi32>
    %c214748365_i32 = arith.constant 214748365 : i32
    %4 = vector.broadcast %c214748365_i32 : i32 to vector<1x1x32xi32>
    %5 = arith.cmpi sge, %3, %4 : vector<1x1x32xi32>
    %cst = arith.constant 1.11111116 : f32
    %cst_8 = arith.constant 0.000000e+00 : f32
    %6 = vector.broadcast %cst : f32 to vector<1x1x32xf32>
    %7 = vector.broadcast %cst_8 : f32 to vector<1x1x32xf32>
    %8 = arith.select %5, %6, %7 : vector<1x1x32xi1>, vector<1x1x32xf32>
    %9 = arith.mulf %2, %8 : vector<1x1x32xf32>
    %c0_9 = arith.constant 0 : index
    %c0_10 = arith.constant 0 : index
    %c0_11 = arith.constant 0 : index
    %10 = vector.load %arg5[%c0_9, %c0_10, %c0_11] : memref<1x1x32xf32, #tpu.memory_space<vmem>>, vector<1x1x32xf32>
    tpu.vector_store %arg5[%c0_9, %c0_10, %c0_11], %9 {strides = array<i32>} : memref<1x1x32xf32, #tpu.memory_space<vmem>>, vector<1x1x32xf32>,
    return
  }
  func.func @transform_0(%arg0: i32, %arg1: memref<16xi32, #tpu.memory_space<smem>>) -> (i32, i32, i32) {
    %0 = arith.index_cast %arg0 : i32 to index
    %1 = memref.load %arg1[%0] : memref<16xi32, #tpu.memory_space<smem>>
    %c0_i32 = arith.constant 0 : i32
    %c0_i32_0 = arith.constant 0 : i32
    %c0_i32_1 = arith.constant 0 : i32
    return %1, %c0_i32, %c0_i32_0 : i32, i32, i32
  }
  func.func @transform_1(%arg0: i32, %arg1: memref<16xi32, #tpu.memory_space<smem>>) -> (i32, i32, i32) {
    %c8_i32 = arith.constant 8 : i32
    %c0_i32 = arith.constant 0 : i32
    %0 = arith.cmpi eq, %c8_i32, %c0_i32 : i32
    %c1_i32 = arith.constant 1 : i32
    %1 = arith.select %0, %c1_i32, %c8_i32 : i32
    %2 = arith.remsi %arg0, %1 : i32
    %c0_i32_0 = arith.constant 0 : i32
    %3 = arith.cmpi ne, %2, %c0_i32_0 : i32
    %c0_i32_1 = arith.constant 0 : i32
    %4 = arith.cmpi slt, %2, %c0_i32_1 : i32
    %c0_i32_2 = arith.constant 0 : i32
    %5 = arith.cmpi slt, %1, %c0_i32_2 : i32
    %6 = arith.xori %4, %5 : i1
    %7 = arith.andi %6, %3 : i1
    %8 = arith.addi %2, %1 : i32
    %9 = arith.select %7, %8, %2 : i32
    %c0_i32_3 = arith.constant 0 : i32
    %c0_i32_4 = arith.constant 0 : i32
    %c0_i32_5 = arith.constant 0 : i32
    return %9, %c0_i32_3, %c0_i32_4 : i32, i32, i32
  }
  func.func @transform_2(%arg0: i32, %arg1: memref<16xi32, #tpu.memory_space<smem>>) -> (i32, i32, i32) {
    %c0_i32 = arith.constant 0 : i32
    %c0_i32_0 = arith.constant 0 : i32
    %c0_i32_1 = arith.constant 0 : i32
    return %arg0, %c0_i32, %c0_i32_0 : i32, i32, i32
  }
  func.func @transform_3(%arg0: i32, %arg1: memref<16xi32, #tpu.memory_space<smem>>) -> (i32, i32, i32) {
    %c0_i32 = arith.constant 0 : i32
    %c0_i32_0 = arith.constant 0 : i32
    %c0_i32_1 = arith.constant 0 : i32
    return %arg0, %c0_i32, %c0_i32_0 : i32, i32, i32
  }
}

</mosaic_0001>

<bundles_post_ra>
// kernel: tpu_custom_call.1
= control target key start
LH: loop header
LB: loop body
LE: loop exit
PB: predicated region body
PF: predicated region fallthrough
CT: control target
= control target key end

     0   :  { %s783_s18 = smov [#allocation3]   ;;  %s1131_s0 = inlined_call_operand.hbm [shape: s32[16], index: 0, kind: input, shape index: {}]   ;;  %s1132_s1 = inlined_call_operand.hbm [shape: f32[30,1,32], index: 1, kind: input, shape index: {}]   ;;  %s1133_s2 = inlined_call_operand.hbm [shape: f32[8,1,32], index: 2, kind: input, shape index: {}]   ;;  %s1134_s3 = inlined_call_operand.hbm [shape: s32[16,1,32], index: 3, kind: input, shape index: {}]   ;;  %s1135_s4 = inlined_call_operand.hbm [shape: f32[16,1,32], index: 4, kind: output, shape index: {}]  }
   0x1   :  { %1144 = sst [smem:[#allocation23_spill]] %s1133_s2  ;;  %s10_s17 = sshll.u32 %s1131_s0, 4  ;;  %s11_s17 = int_to_ptr.hbm [resolvable:$true] %s10_s17 }
   0x2   :  { %13 = dma.hbm_to_smem %s11_s17, 16, %s783_s18, [#allocation2] }
   0x3   :  { %725 = dma.done.wait [#allocation2], 16 }
   0x4   :  { %726 = vsyncadd [#allocation2], 4294967280 }
   0x5   :  { %16 = sfence }
   0x6   :  { %17 = vsyncpa [#allocation5], 0 }
   0x7   :  { %19 = vsyncpa [#allocation5 + $0x1], 0 }
   0x8   :  { %20 = vsyncpa [#allocation8], 0 }
   0x9   :  { %22 = vsyncpa [#allocation8 + $0x1], 0 }
   0xa   :  { %23 = vsyncpa [#allocation6], 0 }
   0xb   :  { %25 = vsyncpa [#allocation6 + $0x1], 0  ;;  %s813_s19 = smov 0   ;;  %s815_s20 = smov 0  }
   0xc   :  { %s817_s21 = smov 0   ;;  %s819_s22 = smov 0  }
   0xd   :  { %s821_s0 = smov 0   ;;  %s823_s23 = smov 0  }
   0xe   :  { %s825_s24 = smov 0   ;;  %s827_s25 = smov 0  }
   0xf   :  { %s829_s26 = smov 0   ;;  %s831_s27 = smov 0  }
  0x10 LB: > { %1145 = sst [smem:[#allocation18_spill]] %s765_s23  ;;  %s864_s28 = sadd.s32 4294967295, %s781_s27   ;;  %s781_s27 = sphi %s831_s27, %s1171_s27   ;;  %s777_s26 = sphi %s829_s26, %s1175_s26   ;;  %s773_s25 = sphi %s827_s25, %s1183_s25   ;;  %s769_s24 = sphi %s825_s24, %s1182_s24   ;;  %s765_s23 = sphi %s823_s23, %s1181_s23   ;;  %s761_s0 = sphi %s821_s0, %s1180_s0   ;;  %s757_s22 = sphi %s819_s22, %s1179_s22   ;;  %s753_s21 = sphi %s817_s21, %s1178_s21   ;;  %s749_s20 = sphi %s815_s20, %s1177_s20   ;;  %s745_s19 = sphi %s813_s19, %s1176_s19  }
  0x11   : > { %1146 = sst [smem:[#allocation19_spill]] %s777_s26  ;;  %s867_s29 = sadd.s32 1, %s781_s27  }
  0x12   : > { %1147 = sst [smem:[#allocation20_spill]] %s867_s29  ;;  %p48_p0 = scmp.eq.s32.totalorder %s781_s27, 0 }
  0x13   : > { %p54_p1 = scmp.eq.s32.totalorder %s864_s28, 0  ;;  %p63_p2 = scmp.lt.s32.totalorder %s781_s27, 0 }
  0x14   : > { %s64_s30 = ssub.s32 0, %s781_s27  ;;  %p75_p3 = scmp.lt.s32.totalorder %s867_s29, 0 }
  0x15   : > { %s431_s5 = smin.u32 %s781_s27, %s64_s30  ;;  %s76_s7 = ssub.s32 0, %s867_s29 }
  0x16   : > { %s66_s6 = sand.u32 7, %s431_s5   ;;  %s434_s9 = smin.u32 %s76_s7, %s867_s29 }
  0x17   : > { %s67_s8 = ssub.s32 0, %s66_s6  ;;  %s78_s10 = sand.u32 7, %s434_s9  }
  0x18   : > { %s1185_s8 = smov (!%p63_p2, %s67_s8), %s66_s6  ;;  %s90_s11 = sadd.s32 1, %s765_s23 }
  0x19   : > { %p433_p4 = scmp.lt.s32.totalorder %s1185_s8, 0  ;;  %s73_s12 = sadd.s32 8, %s1185_s8 }
  0x1a   : > { %s79_s13 = ssub.s32 0, %s78_s10  ;;  %p97_p5 = scmp.ne.s32.totalorder %s765_s23, %s761_s0 }
  0x1b   : > { %s1187_s12 = smov (!%p433_p4, %s73_s12), %s1185_s8  ;;  %s1189_s13 = smov (!%p75_p3, %s79_s13), %s78_s10 }
  0x1c   : > { %p882_p6 = por %p97_p5, %p48_p0  ;;  %p103_p7 = scmp.ne.s32.totalorder %s761_s0, %s757_s22 }
  0x1d   : > { %p436_p8 = scmp.lt.s32.totalorder %s1189_s13, 0  ;;  %s85_s15 = sadd.s32 8, %s1189_s13 }
  0x1e   : > { %p890_p9 = por %p103_p7, %p54_p1  ;;  %p1136_p10 = scmp.lt.s32.totalorder %s781_s27, 16 }
  0x1f   : > { %s1191_s15 = smov (!%p436_p8, %s85_s15), %s1189_s13  ;;  %s197_s17 = sand.u32 1, %s781_s27  }
  0x20   : > { %s1149_s16 = scalar_select %p890_p9, 1, 0 }
  0x21   : > { %s87_s18 = ssub.s32 %s1187_s12, %s1191_s15  ;;  %s199_s30 = sand.u32 1, %s765_s23  }
  0x22   : > { %p88_p11 = scmp.eq.s32.totalorder %s87_s18, 0  ;;  %s1150_s2 = sld [smem:[#allocation23_spill]] }
  0x23   : > { %s200_s9 = scalar_lea.vmem [#allocation7], %s199_s30  ;;  %p907_p12 = pnand %p1136_p10, %p882_p6 }
  0x24   : > { %s901_s7 = scalar_select %p88_p11, %s765_s23, %s90_s11  }
  0x25   : > { %s219_s10 = sshll.u32 %s200_s9, 4  ;;  %p442_p13 = scmp.ge.s32.totalorder %s781_s27, 1  ;;  %s220_s10 = int_to_ptr.vmem [resolvable:$true] %s219_s10 }
  0x26   : > { %1151 = sst [smem:[#allocation21_spill]] %s901_s7  ;;  %p241_p2 = scmp.lt.s32.totalorder %s781_s27, 17 }
  0x27   : > { %s913_s15 = scalar_lea.sflag [#allocation8], %s197_s17  ;;  %p571_p4 = pneg %p907_p12 }
  0x28   : > { %s215_s22 = scalar_lea.hbm %s1150_s2, %s1187_s12  ;;  %s574_s30 = scalar_lea.hbm %s1150_s2, 8 }
  0x29   : > { %s217_s8 = sshll.u32 %s215_s22, 4  ;;  %s218_s8 = int_to_ptr.hbm [resolvable:$true] %s217_s8 }
  0x2a   : > { %s567_s18 = sshra.s32 %s218_s8, 4  ;;  %s568_s18 = int_to_ptr.hbm [resolvable:$true] %s567_s18 }
  0x2b   : > { %s569_s11 = scalar_lea.hbm %s568_s18, 1  ;;  %p575_p6 = scmp.lt.s32.totalorder %s568_s18, %s1150_s2 }
  0x2c   : > { %p570_p3 = scmp.ne.s32.totalorder %s568_s18, %s569_s11  ;;  %p576_p8 = scmp.lt.s32.totalorder %s574_s30, %s569_s11 }
  0x2e   : > { %p572_p5 = pnand %p571_p4, %p570_p3  ;;  %p577_p11 = por %p576_p8, %p575_p6 }
  0x30   : > { %p573_p7 = pneg %p572_p5 }
  0x32   : > { %p578_p10 = pnand %p577_p11, %p573_p7 }
  0x34   : > { %581 = shalt.err (!%p578_p10)
}
  0x35   : > { %463 = dma.hbm_to_vmem [thread:$0]  (!%p907_p12), %s218_s8, 16, %s220_s10, %s913_s15  }
  0x36   : > { %p930_p10 = pnand %p442_p13, %p241_p2  ;;  %s35_s22 = sld [smem:[#allocation3 + %s781_s27]] }
  0x37   : > { %s36_s9 = sld [smem:[#allocation3 + %s867_s29]]  ;;  %s40_s13 = sadd.s32 1, %s777_s26 }
  0x38   : > { %p47_p3 = scmp.ne.s32.totalorder %s777_s26, %s773_s25  ;;  %p53_p4 = scmp.ne.s32.totalorder %s773_s25, %s769_s24 }
  0x39   : > { %s179_s18 = sand.u32 1, %s777_s26   ;;  %p1156_p5 = scmp.lt.s32.totalorder %s781_s27, 16 }
  0x3a   : > { %p49_p12 = por %p48_p0, %p47_p3  ;;  %p946_p13 = por %p54_p1, %p53_p4 }
  0x3b   : > { %s182_s12 = scalar_lea.vmem [#allocation4], %s179_s18  ;;  %p1157_p7 = pmov %p1156_p5 }
  0x3c   : > { %s445_s10 = scalar_select %p49_p12, [#allocation3], [#allocation11] }
  0x3d   : > { %s37_s11 = ssub.s32 %s35_s22, %s36_s9  ;;  %s190_s24 = sshll.u32 %s182_s12, 4  ;;  %s950_s24 = int_to_ptr.vmem [resolvable:$true] %s190_s24 }
  0x3e   : > { %p38_p2 = scmp.eq.s32.totalorder %s37_s11, 0  ;;  %s1193_s10 = smov (!%p1156_p5, %s445_s10), [#allocation12] }
  0x3f   : > { %s446_s14 = scalar_select %p49_p12, %s781_s27, 0 }
  0x40   : > { %s954_s30 = scalar_select %p38_p2, %s777_s26, %s40_s13  }
  0x41   : > { %s1195_s14 = smov (!%p1157_p7, %s446_s14), 0  ;;  %p1158_p6 = pmov %p1156_p5 }
  0x42   : > { %1155 = sst [smem:[#allocation22_spill]] %s954_s30  ;;  %s430_s22 = sadd.s32 4294967294, %s781_s27  }
  0x43   : > { %p962_p8 = pnand %p1158_p6, %p49_p12  ;;  %s183_s6 = sld [smem:[%s1193_s10 + %s1195_s14]] }
  0x44   : > { %s113_s9 = ssub.s32 %s781_s27, %s867_s29  ;;  %s116_s13 = sadd.s32 1, %s753_s21 }
  0x45   : > { %p969_p11 = scmp.eq.s32.totalorder %s113_s9, 0  ;;  %p1143_p3 = scmp.ne.s32.totalorder %s753_s21, %s749_s20 }
  0x46   : > { %p1142_p4 = scmp.ne.s32.totalorder %s749_s20, %s745_s19  ;;  %s180_s9 = scalar_lea.sflag [#allocation5], %s179_s18 }
  0x47   : > { %p987_p12 = por %p1143_p3, %p48_p0  ;;  %p601_p6 = pneg %p962_p8 }
  0x48   : > { %p996_p5 = por %p1142_p4, %p54_p1  ;;  %s604_s12 = scalar_lea.hbm %s1132_s1, 30 }
  0x49   : > { %s186_s30 = scalar_lea.hbm %s1132_s1, %s183_s6 }
  0x4a   : > { %s188_s26 = sshll.u32 %s186_s30, 4  ;;  %s189_s26 = int_to_ptr.hbm [resolvable:$true] %s188_s26 }
  0x4b   : > { %s597_s7 = sshra.s32 %s189_s26, 4  ;;  %s598_s7 = int_to_ptr.hbm [resolvable:$true] %s597_s7 }
  0x4c   : > { %s599_s2 = scalar_lea.hbm %s598_s7, 1  ;;  %p605_p0 = scmp.lt.s32.totalorder %s598_s7, %s1132_s1 }
  0x4d   : > { %p600_p7 = scmp.ne.s32.totalorder %s598_s7, %s599_s2  ;;  %p606_p1 = scmp.lt.s32.totalorder %s604_s12, %s599_s2 }
  0x4f   : > { %p602_p2 = pnand %p601_p6, %p600_p7  ;;  %p607_p4 = por %p606_p1, %p605_p0 }
  0x51   : > { %p603_p9 = pneg %p602_p2 }
  0x53   : > { %p608_p3 = pnand %p607_p4, %p603_p9 }
  0x55   : > { %611 = shalt.err (!%p608_p3)
}
  0x56   : > { %460 = dma.hbm_to_vmem [thread:$0]  (!%p962_p8), %s189_s26, 16, %s950_s24, %s180_s9  }
  0x57   : > { %s1014_s23 = scalar_select %p969_p11, %s753_s21, %s116_s13  }
  0x58   : > { %p1163_p9 = scmp.ne.s32.totalorder %s753_s21, %s749_s20  ;;  %p1164_p3 = scmp.eq.s32.totalorder %s864_s28, 15 }
  0x59   : > { %p159_p2 = scmp.eq.s32.totalorder %s430_s22, 15  ;;  %s228_s7 = sand.u32 1, %s753_s21  }
  0x5a   : > { %p1021_p4 = por %p1164_p3, %p1163_p9  ;;  %s232_s2 = scalar_lea.hbm %s1134_s3, %s781_s27 }
  0x5b   : > { %p1166_p7 = scmp.ne.s32.totalorder %s749_s20, %s745_s19  ;;  %s234_s26 = sshll.u32 %s232_s2, 4  ;;  %s235_s26 = int_to_ptr.hbm [resolvable:$true] %s234_s26 }
  0x5c   : > { %s229_s24 = scalar_lea.vmem [#allocation9], %s228_s7  ;;  %p1168_p8 = scmp.lt.s32.totalorder %s781_s27, 16 }
  0x5d   : > { %p1033_p6 = por %p159_p2, %p1166_p7  ;;  %s236_s11 = sshll.u32 %s229_s24, 4  ;;  %s237_s11 = int_to_ptr.vmem [resolvable:$true] %s236_s11 }
  0x5e   : > { %p1041_p11 = pnand %p1168_p8, %p987_p12  ;;  %s627_s22 = sshra.s32 %s235_s26, 4  ;;  %s628_s22 = int_to_ptr.hbm [resolvable:$true] %s627_s22 }
  0x5f   : > { %s629_s9 = scalar_lea.hbm %s628_s22, 1  ;;  %s634_s7 = scalar_lea.hbm %s1134_s3, 16 }
  0x60   : > { %p630_p0 = scmp.ne.s32.totalorder %s628_s22, %s629_s9  ;;  %p631_p1 = pneg %p1041_p11 }
  0x61   : > { %p635_p12 = scmp.lt.s32.totalorder %s628_s22, %s1134_s3  ;;  %p636_p2 = scmp.lt.s32.totalorder %s634_s7, %s629_s9 }
  0x62   : > { %p632_p9 = pnand %p631_p1, %p630_p0 }
  0x63   : > { %p637_p7 = por %p636_p2, %p635_p12 }
  0x64   : > { %p633_p3 = pneg %p632_p9 }
  0x66   : > { %p638_p8 = pnand %p637_p7, %p633_p3 }
  0x68   : > { %641 = shalt.err (!%p638_p8)
}
  0x69   : > { %466 = dma.hbm_to_vmem [thread:$0]  (!%p1041_p11), %s235_s26, 16, %s237_s11, %s913_s15  }
  0x6a   : > { %245 = sbr.rel (%p930_p10) target bundleno = 134 (0x86), region = 32  ;;  %s247_s5 = sand.u32 (!%p930_p10), 1, %s773_s25  }
  0x6b   : > { %s248_s2 = scalar_lea.sflag (!%p930_p10), [#allocation5], %s247_s5  ;;  %s250_s24 = scalar_lea.vmem (!%p930_p10), [#allocation4], %s247_s5 }
  0x6f   : > { %728 = dma.done.wait (%p946_p13), %s248_s2, 16  }
  0x70   : > { %730 = vsyncadd (%p946_p13), %s248_s2, 4294967280  ;;  %s256_s22 = sand.u32 1, %s864_s28   ;;  %s258_s13 = sand.u32 1, %s761_s0  }
  0x71   : > { %s257_s9 = scalar_lea.sflag [#allocation8], %s256_s22  ;;  %s259_s15 = scalar_lea.vmem [#allocation7], %s258_s13 }
  0x72   : > { %p1170_p11 = scmp.ne.s32.totalorder %s1149_s16, 0 }
  0x74   : > { %732 = dma.done.wait (%p1170_p11), %s257_s9, 16  }
  0x75   : > { %734 = vsyncadd (%p1170_p11), %s257_s9, 4294967280  ;;  %s1070_s17 = sand.u32 1, %s749_s20  }
  0x76   : > { %s268_s26 = scalar_lea.vmem [#allocation9], %s1070_s17 }
  0x77   : > { %736 = dma.done.wait (%p996_p5), %s257_s9, 16  }
  0x78   : > { %738 = vsyncadd (%p996_p5), %s257_s9, 4294967280  ;;  %s329_s6 = scalar_lea.hbm %s1135_s4, %s864_s28  ;;  %s297_s16 = scalar_lea.vmem [#allocation10], %s1070_s17  ;;  %v311_v0 = vld [vmem:[%s250_s24] sm:$0x1]  ;;  %v784_v4 = vmov 0.0   ;;  %vm318_vm1 = vcmask 253952  }
  0x79   : > { %s1082_s12 = sshll.u32 %s297_s16, 4  ;;  %s333_s7 = sshll.u32 %s329_s6, 4  ;;  %v312_v1 = vld [vmem:[%s259_s15] sm:$0x1]  ;;  %s332_s12 = int_to_ptr.vmem [resolvable:$true] %s1082_s12  ;;  %s334_s7 = int_to_ptr.hbm [resolvable:$true] %s333_s7 }
  0x7a   : > { %v314_v2 = vld [vmem:[%s268_s26] sm:$0x1]  ;;  %v313_v3 = vadd.f32 %v312_v1, %v311_v0  ;;  %s321_s28 = scalar_lea.sflag [#allocation6], %s1070_s17  ;;  %s671_s14 = sshra.s32 %s334_s7, 4  ;;  %s672_s14 = int_to_ptr.hbm [resolvable:$true] %s671_s14 }
  0x7b   : > { %vm315_vm0 = vcmp.ge.s32.totalorder %v314_v2, 214748365  ;;  %s673_s18 = scalar_lea.hbm %s672_s14, 1  ;;  %s677_s2 = scalar_lea.hbm %s1135_s4, 16 }
  0x7c   : > { %v316_v5 = vsel %vm315_vm0, 1.1111112, %v784_v4  ;;  %p674_p10 = scmp.ne.s32.totalorder %s672_s14, %s673_s18  ;;  %p678_p0 = scmp.lt.s32.totalorder %s672_s14, %s1135_s4 }
  0x7d   : > { %v317_v6 = vmul.f32 %v316_v5, %v313_v3  ;;  %p679_p1 = scmp.lt.s32.totalorder %s677_s2, %s673_s18 }
  0x7e   : > { %p675_p13 = pnand %p674_p10, %p1021_p4 }
  0x7f   : > { %319 = vst.msk [vmem:[%s297_s16] sm:$0x1] %vm318_vm1, %v317_v6  ;;  %p680_p9 = por %p679_p1, %p678_p0 }
  0x80   : > { %p676_p5 = pneg %p675_p13 }
  0x82   : > { %p681_p3 = pnand %p680_p9, %p676_p5 }
  0x84   : > { %684 = shalt.err (!%p681_p3)
}
  0x85   : > { %453 = dma.vmem_to_hbm [thread:$0]  (%p1021_p4), %s332_s12, 16, %s334_s7, %s321_s28  }
  0x86 PF: > { %p472_p12 = scmp.ge.s32.totalorder %s781_s27, 2  ;;  %s345_s13 = sand.u32 1, %s745_s19  }
  0x87   : > { %s346_s9 = scalar_lea.sflag [#allocation6], %s345_s13 }
  0x88   : > { %p468_p2 = pnand %p472_p12, %p1033_p6 }
  0x8a   : > { %p469_p7 = pneg %p468_p2 }
  0x8c   : > { %740 = dma.done.wait (%p469_p7), %s346_s9, 16  }
  0x8d   : > { %742 = vsyncadd (%p469_p7), %s346_s9, 4294967280  ;;  %s1171_s27 = sld [smem:[#allocation20_spill]]  ;;  %s1176_s19 = smov %s749_s20 }
  0x8e   : > { %s1172_s15 = sld [smem:[#allocation18_spill]]  ;;  %s1177_s20 = smov %s753_s21 }
  0x8f   : > { %s1173_s29 = sld [smem:[#allocation21_spill]]  ;;  %s1178_s21 = smov %s1014_s23 }
  0x90   : > { %s1174_s17 = sld [smem:[#allocation19_spill]]  ;;  %s1179_s22 = smov %s761_s0 }
  0x91   : > { %s1175_s26 = sld [smem:[#allocation22_spill]]  ;;  %s1182_s24 = smov %s773_s25 }
  0x93   : > { %p28_p4 = scmp.ge.s32.totalorder %s1171_s27, 18  }
  0x94   : > { %s1180_s0 = smov %s1172_s15 }
  0x95   : > { %s1181_s23 = smov %s1173_s29  ;;  %30 = sbr.rel (!%p28_p4) target bundleno = 16 (0x10), region = 101 }
  0x96   : > { %s1183_s25 = smov %s1174_s17 }
  0x9a   :  { %351 = vsyncpa [#allocation5], 1 }
  0x9b   :  { %353 = vsyncpa [#allocation5 + $0x1], 1 }
  0x9c   :  { %354 = vsyncpa [#allocation8], 1 }
  0x9d   :  { %356 = vsyncpa [#allocation8 + $0x1], 1 }
  0x9e   :  { %357 = vsyncpa [#allocation6], 1 }
  0x9f   :  { %359 = vsyncpa [#allocation6 + $0x1], 1 }

</bundles_post_ra>
